<compile_context>
chip_gen: v6e
topology: v6e:2x2x1
jax: 0.10.0
libtpu: 0.0.40
codegen_flags: <defaults>
</compile_context>

<pallas_src>
import functools

import jax
import jax.numpy as jnp
from jax.experimental import pallas as pl
from jax.experimental.pallas import tpu as pltpu


def _g_loss_kernel(feat_ref, right_ref, fake_ref,
                   loss_ref, loss_fake_ref,
                   acc_lf, acc_feat, acc_right, acc_fake,
                   *, batch, need_mask):
    step = pl.program_id(0)
    nsteps = pl.num_programs(0)
    tile = feat_ref.shape[0]

    @pl.when(step == 0)
    def _init():
        acc_lf[...] = jnp.zeros_like(acc_lf)
        acc_feat[...] = jnp.zeros_like(acc_feat)
        acc_right[...] = jnp.zeros_like(acc_right)
        acc_fake[...] = jnp.zeros_like(acc_fake)

    # Keep all arithmetic in f32 inside the kernel (bf16 inputs are upcast here).
    feat = feat_ref[...].astype(jnp.float32)    # (TB, D)
    right = right_ref[...].astype(jnp.float32)  # (TB, D)
    fake = fake_ref[...].astype(jnp.float32)    # (TB, D)

    # Fused row-wise dot: right_dis - fake_dis = <right - fake, feat>.
    # TODO(synk): for D < 128, pack several rows lane-dense per 128-lane slab to
    # use the full vreg width; with the small demo D this is left as-is.
    diff = jnp.sum((right - fake) * feat, axis=-1, keepdims=True)   # (TB, 1)
    per_row_lf = jnp.log(jnp.exp(diff) + 1.0)                       # (TB, 1)

    feat_sq = jnp.sum(feat * feat, axis=-1, keepdims=True)          # (TB, 1)
    right_sq = jnp.sum(right * right, axis=-1, keepdims=True)       # (TB, 1)
    fake_sq = jnp.sum(fake * fake, axis=-1, keepdims=True)          # (TB, 1)

    if need_mask:  # static (trace-time) flag: only emitted when B % TB != 0
        row = step * tile + jax.lax.broadcasted_iota(jnp.int32, (tile, 1), 0)
        valid = row < batch
        zero = jnp.zeros_like(per_row_lf)
        per_row_lf = jnp.where(valid, per_row_lf, zero)
        feat_sq = jnp.where(valid, feat_sq, zero)
        right_sq = jnp.where(valid, right_sq, zero)
        fake_sq = jnp.where(valid, fake_sq, zero)

    acc_lf[...] += jnp.sum(per_row_lf, keepdims=True)
    acc_feat[...] += jnp.sum(feat_sq, keepdims=True)
    acc_right[...] += jnp.sum(right_sq, keepdims=True)
    acc_fake[...] += jnp.sum(fake_sq, keepdims=True)

    @pl.when(step == nsteps - 1)
    def _finalize():
        loss_fake_total = acc_lf[...]                                # (1, 1)
        loss_norm = (jnp.sqrt(acc_feat[...]) + jnp.sqrt(acc_fake[...])
                     + jnp.sqrt(acc_right[...]))                     # (1, 1)
        inv_b = jnp.float32(1.0 / batch)
        loss_ref[...] = (loss_fake_total + 0.1 * loss_norm) * inv_b
        loss_fake_ref[...] = loss_fake_total * inv_b


def _pick_batch_tile(B, D):
    # 3 inputs x 2 pipeline buffers x TB x D x 4B kept well under the scoped
    # VMEM limit on every generation (v7x is the tightest: 64 MiB physical).
    budget_bytes = 12 * 1024 * 1024
    tb = budget_bytes // (3 * 2 * max(D, 1) * 4)
    tb = min(tb, 1024, max(B, 1))
    tb = max(8, (tb // 8) * 8)   # sublane-aligned
    return tb


@jax.jit
def g_loss(feat, right, fake):
    """Pallas version of G_loss.forward.

    Inputs: (batch, ninp) arrays. Returns (loss, loss_fake / batch) as 0-d
    float32 device arrays (no host sync; caller converts if desired).
    """
    B, D = feat.shape
    assert right.shape == (B, D) and fake.shape == (B, D)

    tb = _pick_batch_tile(B, D)
    grid = (pl.cdiv(B, tb),)
    need_mask = (B % tb) != 0

    kernel = functools.partial(_g_loss_kernel, batch=B, need_mask=need_mask)

    in_spec = pl.BlockSpec((tb, D), lambda i: (i, 0))
    out_spec = pl.BlockSpec((1, 1), lambda i: (0, 0))  # resident across the grid

    cost = pl.CostEstimate(
        flops=9 * B * D + 8 * B,
        transcendentals=2 * B + 3,
        bytes_accessed=3 * B * D * 4 + 8,
    )

    loss, loss_fake = pl.pallas_call(
        kernel,
        out_shape=(
            jax.ShapeDtypeStruct((1, 1), jnp.float32),
            jax.ShapeDtypeStruct((1, 1), jnp.float32),
        ),
        grid=grid,
        in_specs=[in_spec, in_spec, in_spec],
        out_specs=(out_spec, out_spec),
        scratch_shapes=[pltpu.VMEM((1, 1), jnp.float32)] * 4,
        compiler_params=pltpu.CompilerParams(
            dimension_semantics=("arbitrary",),   # reduction axis, not parallel
            vmem_limit_bytes=32 * 1024 * 1024,
        ),
        cost_estimate=cost,
    )(feat, right, fake)

    return loss[0, 0], loss_fake[0, 0]


if __name__ == "__main__":
    batch, ninp = 8, 32
    key = jax.random.PRNGKey(0)
    k_feat, k_right, k_fake = jax.random.split(key, 3)
    feat = jax.random.normal(k_feat, (batch, ninp), dtype=jnp.float32)
    right = jax.random.normal(k_right, (batch, ninp), dtype=jnp.float32)
    fake = jax.random.normal(k_fake, (batch, ninp), dtype=jnp.float32)

    loss, loss_fake_per_b = g_loss(feat, right, fake)
    jax.block_until_ready((loss, loss_fake_per_b))

    # Pure-JAX reference check (same math as the PyTorch module).
    fd = jnp.sum(fake * feat, axis=-1)
    rd = jnp.sum(right * feat, axis=-1)
    lf_ref = jnp.sum(jnp.log(jnp.exp(rd - fd) + 1.0))
    ln_ref = (jnp.linalg.norm(feat) + jnp.linalg.norm(fake)
              + jnp.linalg.norm(right))
    loss_ref = (lf_ref + 0.1 * ln_ref) / batch
    assert jnp.allclose(loss, loss_ref, rtol=1e-5, atol=1e-5)
    assert abs(float(loss_fake_per_b) - float(lf_ref) / batch) < 1e-4

    print("KERNEL_OK")
</pallas_src>

<mosaic_0001>
module attributes {stable_mosaic.version = 11 : i64} {
  func.func @_g_loss_kernel(%arg0: i32, %arg1: memref<8x32xf32, #tpu.memory_space<vmem>>, %arg2: memref<8x32xf32, #tpu.memory_space<vmem>>, %arg3: memref<8x32xf32, #tpu.memory_space<vmem>>, %arg4: memref<1x1xf32, #tpu.memory_space<vmem>>, %arg5: memref<1x1xf32, #tpu.memory_space<vmem>>, %arg6: memref<1x1xf32, #tpu.memory_space<vmem>>, %arg7: memref<1x1xf32, #tpu.memory_space<vmem>>, %arg8: memref<1x1xf32, #tpu.memory_space<vmem>>, %arg9: memref<1x1xf32, #tpu.memory_space<vmem>>) attributes {dimension_semantics = [#tpu.dimension_semantics<arbitrary>], iteration_bounds = array<i64: 1>, scalar_prefetch = 0 : i64, scratch_operands = 4 : i64, tpu.core_type = #tpu.core_type<tc>, window_params = [{transform_indices = @transform_0, window_bounds = array<i64: 8, 32>}, {transform_indices = @transform_1, window_bounds = array<i64: 8, 32>}, {transform_indices = @transform_2, window_bounds = array<i64: 8, 32>}, {pipeline_mode = #tpu.pipeline_mode<synchronous>, transform_indices = @transform_3, window_bounds = array<i64: 1, 1>}, {pipeline_mode = #tpu.pipeline_mode<synchronous>, transform_indices = @transform_4, window_bounds = array<i64: 1, 1>}]} {
    %c0_i32 = arith.constant 0 : i32
    %0 = arith.cmpi eq, %arg0, %c0_i32 : i32
    %1 = arith.extui %0 : i1 to i32
    %c0_i32_0 = arith.constant 0 : i32
    %2 = arith.cmpi ne, %1, %c0_i32_0 : i32
    scf.if %2 {
      %cst_32 = arith.constant 0.000000e+00 : f32
      %58 = vector.broadcast %cst_32 : f32 to vector<1x1xf32>
      %c0_33 = arith.constant 0 : index
      %c0_34 = arith.constant 0 : index
      %59 = vector.load %arg6[%c0_33, %c0_34] : memref<1x1xf32, #tpu.memory_space<vmem>>, vector<1x1xf32>
      tpu.vector_store %arg6[%c0_33, %c0_34], %58 {strides = array<i32>} : memref<1x1xf32, #tpu.memory_space<vmem>>, vector<1x1xf32>,
      %cst_35 = arith.constant 0.000000e+00 : f32
      %60 = vector.broadcast %cst_35 : f32 to vector<1x1xf32>
      %c0_36 = arith.constant 0 : index
      %c0_37 = arith.constant 0 : index
      %61 = vector.load %arg7[%c0_36, %c0_37] : memref<1x1xf32, #tpu.memory_space<vmem>>, vector<1x1xf32>
      tpu.vector_store %arg7[%c0_36, %c0_37], %60 {strides = array<i32>} : memref<1x1xf32, #tpu.memory_space<vmem>>, vector<1x1xf32>,
      %cst_38 = arith.constant 0.000000e+00 : f32
      %62 = vector.broadcast %cst_38 : f32 to vector<1x1xf32>
      %c0_39 = arith.constant 0 : index
      %c0_40 = arith.constant 0 : index
      %63 = vector.load %arg8[%c0_39, %c0_40] : memref<1x1xf32, #tpu.memory_space<vmem>>, vector<1x1xf32>
      tpu.vector_store %arg8[%c0_39, %c0_40], %62 {strides = array<i32>} : memref<1x1xf32, #tpu.memory_space<vmem>>, vector<1x1xf32>,
      %cst_41 = arith.constant 0.000000e+00 : f32
      %64 = vector.broadcast %cst_41 : f32 to vector<1x1xf32>
      %c0_42 = arith.constant 0 : index
      %c0_43 = arith.constant 0 : index
      %65 = vector.load %arg9[%c0_42, %c0_43] : memref<1x1xf32, #tpu.memory_space<vmem>>, vector<1x1xf32>
      tpu.vector_store %arg9[%c0_42, %c0_43], %64 {strides = array<i32>} : memref<1x1xf32, #tpu.memory_space<vmem>>, vector<1x1xf32>,
    } else {
    }
    %c0 = arith.constant 0 : index
    %c0_1 = arith.constant 0 : index
    %3 = vector.load %arg1[%c0, %c0_1] : memref<8x32xf32, #tpu.memory_space<vmem>>, vector<8x32xf32>
    %c0_2 = arith.constant 0 : index
    %c0_3 = arith.constant 0 : index
    %4 = vector.load %arg2[%c0_2, %c0_3] : memref<8x32xf32, #tpu.memory_space<vmem>>, vector<8x32xf32>
    %c0_4 = arith.constant 0 : index
    %c0_5 = arith.constant 0 : index
    %5 = vector.load %arg3[%c0_4, %c0_5] : memref<8x32xf32, #tpu.memory_space<vmem>>, vector<8x32xf32>
    %6 = arith.subf %4, %5 : vector<8x32xf32>
    %7 = arith.mulf %6, %3 : vector<8x32xf32>
    %cst = arith.constant dense<0.000000e+00> : vector<8xf32>
    %8 = vector.multi_reduction <add>, %7, %cst [1] : vector<8x32xf32> to vector<8xf32>
    %9 = vector.shape_cast %8 : vector<8xf32> to vector<8x1xf32>
    %10 = math.exp %9 : vector<8x1xf32>
    %cst_6 = arith.constant 1.000000e+00 : f32
    %11 = vector.broadcast %cst_6 : f32 to vector<8x1xf32>
    %12 = arith.addf %10, %11 : vector<8x1xf32>
    %13 = math.log %12 : vector<8x1xf32>
    %14 = arith.mulf %3, %3 : vector<8x32xf32>
    %cst_7 = arith.constant dense<0.000000e+00> : vector<8xf32>
    %15 = vector.multi_reduction <add>, %14, %cst_7 [1] : vector<8x32xf32> to vector<8xf32>
    %16 = vector.shape_cast %15 : vector<8xf32> to vector<8x1xf32>
    %17 = arith.mulf %4, %4 : vector<8x32xf32>
    %cst_8 = arith.constant dense<0.000000e+00> : vector<8xf32>
    %18 = vector.multi_reduction <add>, %17, %cst_8 [1] : vector<8x32xf32> to vector<8xf32>
    %19 = vector.shape_cast %18 : vector<8xf32> to vector<8x1xf32>
    %20 = arith.mulf %5, %5 : vector<8x32xf32>
    %cst_9 = arith.constant dense<0.000000e+00> : vector<8xf32>
    %21 = vector.multi_reduction <add>, %20, %cst_9 [1] : vector<8x32xf32> to vector<8xf32>
    %22 = vector.shape_cast %21 : vector<8xf32> to vector<8x1xf32>
    %c0_10 = arith.constant 0 : index
    %c0_11 = arith.constant 0 : index
    %23 = vector.load %arg6[%c0_10, %c0_11] : memref<1x1xf32, #tpu.memory_space<vmem>>, vector<1x1xf32>
    %24 = vector.shape_cast %13 : vector<8x1xf32> to vector<1x8x1xf32>
    %cst_12 = arith.constant dense<0.000000e+00> : vector<1xf32>
    %25 = vector.multi_reduction <add>, %24, %cst_12 [1, 2] : vector<1x8x1xf32> to vector<1xf32>
    %26 = vector.shape_cast %25 : vector<1xf32> to vector<1x1x1xf32>
    %27 = vector.extract %26[0, 0, 0] : f32 from vector<1x1x1xf32>
    %28 = vector.broadcast %27 : f32 to vector<1x1xf32>
    %29 = arith.addf %23, %28 : vector<1x1xf32>
    %c0_13 = arith.constant 0 : index
    %c0_14 = arith.constant 0 : index
    %30 = vector.load %arg6[%c0_13, %c0_14] : memref<1x1xf32, #tpu.memory_space<vmem>>, vector<1x1xf32>
    tpu.vector_store %arg6[%c0_13, %c0_14], %29 {strides = array<i32>} : memref<1x1xf32, #tpu.memory_space<vmem>>, vector<1x1xf32>,
    %c0_15 = arith.constant 0 : index
    %c0_16 = arith.constant 0 : index
    %31 = vector.load %arg7[%c0_15, %c0_16] : memref<1x1xf32, #tpu.memory_space<vmem>>, vector<1x1xf32>
    %32 = vector.shape_cast %16 : vector<8x1xf32> to vector<1x8x1xf32>
    %cst_17 = arith.constant dense<0.000000e+00> : vector<1xf32>
    %33 = vector.multi_reduction <add>, %32, %cst_17 [1, 2] : vector<1x8x1xf32> to vector<1xf32>
    %34 = vector.shape_cast %33 : vector<1xf32> to vector<1x1x1xf32>
    %35 = vector.extract %34[0, 0, 0] : f32 from vector<1x1x1xf32>
    %36 = vector.broadcast %35 : f32 to vector<1x1xf32>
    %37 = arith.addf %31, %36 : vector<1x1xf32>
    %c0_18 = arith.constant 0 : index
    %c0_19 = arith.constant 0 : index
    %38 = vector.load %arg7[%c0_18, %c0_19] : memref<1x1xf32, #tpu.memory_space<vmem>>, vector<1x1xf32>
    tpu.vector_store %arg7[%c0_18, %c0_19], %37 {strides = array<i32>} : memref<1x1xf32, #tpu.memory_space<vmem>>, vector<1x1xf32>,
    %c0_20 = arith.constant 0 : index
    %c0_21 = arith.constant 0 : index
    %39 = vector.load %arg8[%c0_20, %c0_21] : memref<1x1xf32, #tpu.memory_space<vmem>>, vector<1x1xf32>
    %40 = vector.shape_cast %19 : vector<8x1xf32> to vector<1x8x1xf32>
    %cst_22 = arith.constant dense<0.000000e+00> : vector<1xf32>
    %41 = vector.multi_reduction <add>, %40, %cst_22 [1, 2] : vector<1x8x1xf32> to vector<1xf32>
    %42 = vector.shape_cast %41 : vector<1xf32> to vector<1x1x1xf32>
    %43 = vector.extract %42[0, 0, 0] : f32 from vector<1x1x1xf32>
    %44 = vector.broadcast %43 : f32 to vector<1x1xf32>
    %45 = arith.addf %39, %44 : vector<1x1xf32>
    %c0_23 = arith.constant 0 : index
    %c0_24 = arith.constant 0 : index
    %46 = vector.load %arg8[%c0_23, %c0_24] : memref<1x1xf32, #tpu.memory_space<vmem>>, vector<1x1xf32>
    tpu.vector_store %arg8[%c0_23, %c0_24], %45 {strides = array<i32>} : memref<1x1xf32, #tpu.memory_space<vmem>>, vector<1x1xf32>,
    %c0_25 = arith.constant 0 : index
    %c0_26 = arith.constant 0 : index
    %47 = vector.load %arg9[%c0_25, %c0_26] : memref<1x1xf32, #tpu.memory_space<vmem>>, vector<1x1xf32>
    %48 = vector.shape_cast %22 : vector<8x1xf32> to vector<1x8x1xf32>
    %cst_27 = arith.constant dense<0.000000e+00> : vector<1xf32>
    %49 = vector.multi_reduction <add>, %48, %cst_27 [1, 2] : vector<1x8x1xf32> to vector<1xf32>
    %50 = vector.shape_cast %49 : vector<1xf32> to vector<1x1x1xf32>
    %51 = vector.extract %50[0, 0, 0] : f32 from vector<1x1x1xf32>
    %52 = vector.broadcast %51 : f32 to vector<1x1xf32>
    %53 = arith.addf %47, %52 : vector<1x1xf32>
    %c0_28 = arith.constant 0 : index
    %c0_29 = arith.constant 0 : index
    %54 = vector.load %arg9[%c0_28, %c0_29] : memref<1x1xf32, #tpu.memory_space<vmem>>, vector<1x1xf32>
    tpu.vector_store %arg9[%c0_28, %c0_29], %53 {strides = array<i32>} : memref<1x1xf32, #tpu.memory_space<vmem>>, vector<1x1xf32>,
    %c0_i32_30 = arith.constant 0 : i32
    %55 = arith.cmpi eq, %arg0, %c0_i32_30 : i32
    %56 = arith.extui %55 : i1 to i32
    %c0_i32_31 = arith.constant 0 : i32
    %57 = arith.cmpi ne, %56, %c0_i32_31 : i32
    scf.if %57 {
      %c0_32 = arith.constant 0 : index
      %c0_33 = arith.constant 0 : index
      %58 = vector.load %arg6[%c0_32, %c0_33] : memref<1x1xf32, #tpu.memory_space<vmem>>, vector<1x1xf32>
      %c0_34 = arith.constant 0 : index
      %c0_35 = arith.constant 0 : index
      %59 = vector.load %arg7[%c0_34, %c0_35] : memref<1x1xf32, #tpu.memory_space<vmem>>, vector<1x1xf32>
      %60 = math.sqrt %59 : vector<1x1xf32>
      %c0_36 = arith.constant 0 : index
      %c0_37 = arith.constant 0 : index
      %61 = vector.load %arg9[%c0_36, %c0_37] : memref<1x1xf32, #tpu.memory_space<vmem>>, vector<1x1xf32>
      %62 = math.sqrt %61 : vector<1x1xf32>
      %63 = arith.addf %60, %62 : vector<1x1xf32>
      %c0_38 = arith.constant 0 : index
      %c0_39 = arith.constant 0 : index
      %64 = vector.load %arg8[%c0_38, %c0_39] : memref<1x1xf32, #tpu.memory_space<vmem>>, vector<1x1xf32>
      %65 = math.sqrt %64 : vector<1x1xf32>
      %66 = arith.addf %63, %65 : vector<1x1xf32>
      %cst_40 = arith.constant 1.000000e-01 : f32
      %67 = vector.broadcast %cst_40 : f32 to vector<1x1xf32>
      %68 = arith.mulf %67, %66 : vector<1x1xf32>
      %69 = arith.addf %58, %68 : vector<1x1xf32>
      %cst_41 = arith.constant 1.250000e-01 : f32
      %70 = vector.broadcast %cst_41 : f32 to vector<1x1xf32>
      %71 = arith.mulf %69, %70 : vector<1x1xf32>
      %c0_42 = arith.constant 0 : index
      %c0_43 = arith.constant 0 : index
      %72 = vector.load %arg4[%c0_42, %c0_43] : memref<1x1xf32, #tpu.memory_space<vmem>>, vector<1x1xf32>
      tpu.vector_store %arg4[%c0_42, %c0_43], %71 {strides = array<i32>} : memref<1x1xf32, #tpu.memory_space<vmem>>, vector<1x1xf32>,
      %cst_44 = arith.constant 1.250000e-01 : f32
      %73 = vector.broadcast %cst_44 : f32 to vector<1x1xf32>
      %74 = arith.mulf %58, %73 : vector<1x1xf32>
      %c0_45 = arith.constant 0 : index
      %c0_46 = arith.constant 0 : index
      %75 = vector.load %arg5[%c0_45, %c0_46] : memref<1x1xf32, #tpu.memory_space<vmem>>, vector<1x1xf32>
      tpu.vector_store %arg5[%c0_45, %c0_46], %74 {strides = array<i32>} : memref<1x1xf32, #tpu.memory_space<vmem>>, vector<1x1xf32>,
    } else {
    }
    return
  }
  func.func @transform_0(%arg0: i32) -> (i32, i32) {
    %c0_i32 = arith.constant 0 : i32
    %c0_i32_0 = arith.constant 0 : i32
    return %arg0, %c0_i32 : i32, i32
  }
  func.func @transform_1(%arg0: i32) -> (i32, i32) {
    %c0_i32 = arith.constant 0 : i32
    %c0_i32_0 = arith.constant 0 : i32
    return %arg0, %c0_i32 : i32, i32
  }
  func.func @transform_2(%arg0: i32) -> (i32, i32) {
    %c0_i32 = arith.constant 0 : i32
    %c0_i32_0 = arith.constant 0 : i32
    return %arg0, %c0_i32 : i32, i32
  }
  func.func @transform_3(%arg0: i32) -> (i32, i32) {
    %c0_i32 = arith.constant 0 : i32
    %c0_i32_0 = arith.constant 0 : i32
    %c0_i32_1 = arith.constant 0 : i32
    return %c0_i32, %c0_i32_0 : i32, i32
  }
  func.func @transform_4(%arg0: i32) -> (i32, i32) {
    %c0_i32 = arith.constant 0 : i32
    %c0_i32_0 = arith.constant 0 : i32
    %c0_i32_1 = arith.constant 0 : i32
    return %c0_i32, %c0_i32_0 : i32, i32
  }
}

</mosaic_0001>

<bundles_post_ra>
// kernel: g_loss.1
= control target key start
LH: loop header
LB: loop body
LE: loop exit
PB: predicated region body
PF: predicated region fallthrough
CT: control target
= control target key end

     0   :  { %10 = vsyncpa [#allocation7], 0  ;;  %s400_s0 = inlined_call_operand.hbm [shape: f32[8,32], index: 0, kind: input, shape index: {}]   ;;  %s401_s1 = inlined_call_operand.hbm [shape: f32[8,32], index: 1, kind: input, shape index: {}]   ;;  %s402_s2 = inlined_call_operand.hbm [shape: f32[8,32], index: 2, kind: input, shape index: {}]   ;;  %s403_s3 = inlined_call_operand.hbm [shape: f32[1,1], index: 3, kind: output, shape index: {0}]   ;;  %s404_s4 = inlined_call_operand.hbm [shape: f32[1,1], index: 4, kind: output, shape index: {1}]  }
   0x1   :  { %11 = vsyncpa [#allocation10], 0 }
   0x2   :  { %12 = vsyncpa [#allocation8], 0 }
   0x3   :  { %13 = vsyncpa [#allocation14], 0  ;;  %s344_s15 = smov [#allocation9]   ;;  %s345_s17 = smov [#allocation6]  }
   0x4   :  { %s30_s16 = sshll.u32 %s344_s15, 4  ;;  %s20_s18 = sshll.u32 %s345_s17, 4  ;;  %s31_s16 = int_to_ptr.vmem [resolvable:$true] %s30_s16  ;;  %s21_s18 = int_to_ptr.vmem [resolvable:$true] %s20_s18 }
   0x5   :  { %s244_s19 = scalar_lea.vmem %s31_s16, 128  ;;  %p249_p1 = scmp.lt.s32.totalorder %s31_s16, %s31_s16 }
   0x6   :  { %p245_p0 = scmp.ne.s32.totalorder %s31_s16, %s244_s19  ;;  %p250_p2 = scmp.lt.s32.totalorder %s244_s19, %s244_s19 }
   0x8   :  { %p251_p3 = por %p250_p2, %p249_p1 }
   0xa   :  { %p252_p4 = pnand %p251_p3, %p245_p0 }
   0xc   :  { %255 = shalt.err (!%p252_p4)
}
   0xd   :  { %33 = dma.hbm_to_vmem [thread:$0]  %s401_s1, 128, %s31_s16, [#allocation10]  }
   0xe   :  { %s264_s22 = scalar_lea.vmem %s21_s18, 128  ;;  %p269_p6 = scmp.lt.s32.totalorder %s21_s18, %s21_s18 }
   0xf   :  { %p265_p5 = scmp.ne.s32.totalorder %s21_s18, %s264_s22  ;;  %p270_p7 = scmp.lt.s32.totalorder %s264_s22, %s264_s22 }
  0x11   :  { %p271_p8 = por %p270_p7, %p269_p6 }
  0x13   :  { %p272_p9 = pnand %p271_p8, %p265_p5 }
  0x15   :  { %275 = shalt.err (!%p272_p9)
}
  0x16   :  { %23 = dma.hbm_to_vmem [thread:$0]  %s400_s0, 128, %s21_s18, [#allocation7]  }
  0x17   :  { %s346_s25 = smov [#allocation11]  }
  0x18   :  { %s40_s26 = sshll.u32 %s346_s25, 4  ;;  %s41_s26 = int_to_ptr.vmem [resolvable:$true] %s40_s26 }
  0x19   :  { %s284_s27 = scalar_lea.vmem %s41_s26, 128  ;;  %p289_p11 = scmp.lt.s32.totalorder %s41_s26, %s41_s26 }
  0x1a   :  { %p285_p10 = scmp.ne.s32.totalorder %s41_s26, %s284_s27  ;;  %p290_p12 = scmp.lt.s32.totalorder %s284_s27, %s284_s27 }
  0x1c   :  { %p291_p13 = por %p290_p12, %p289_p11 }
  0x1e   :  { %p292_p0 = pnand %p291_p13, %p285_p10 }
  0x20   :  { %295 = shalt.err (!%p292_p0)
}
  0x21   :  { %43 = dma.hbm_to_vmem [thread:$0]  %s402_s2, 128, %s41_s26, [#allocation10]  }
  0x22   :  { %336 = dma.done.wait [#allocation7], 128  }
  0x23   :  { %337 = vsyncadd [#allocation7], 4294967168 }
  0x24   :  { %338 = dma.done.wait [#allocation10], 256  }
  0x25   :  { %339 = vsyncadd [#allocation10], 4294967040  ;;  %v62_v0 = vld [vmem:[#allocation6] sm:$0xff]  ;;  %v63_v1 = vld [vmem:[#allocation9] sm:$0xff]  ;;  %vm67_vm0 = vcmask 261120   ;;  %vm89_vm1 = vcmask 7168  }
  0x26   :  { %v64_v2 = vld [vmem:[#allocation11] sm:$0xff]  ;;  %v80_v4 = vmul.f32 %v63_v1, %v63_v1  ;;  %v76_v8 = vmul.f32 %v62_v0, %v62_v0  ;;  %vm57_vm2 = vcmask 0   ;;  %v347_v25 = vmov 0.0   ;;  %s348_s5 = smov [#allocation13]  }
  0x27   :  { %v65_v3 = vsub.f32 %v63_v1, %v64_v2  ;;  %v84_v5 = vmul.f32 %v64_v2, %v64_v2  ;;  %58 = vst.msk [vmem:[#allocation2] sm:$0x1] %vm57_vm2, %v347_v25  ;;  %59 = vst.msk [vmem:[#allocation3] sm:$0x1] %vm57_vm2, %v347_v25  ;;  %s198_s6 = sshll.u32 %s348_s5, 4  ;;  %s199_s6 = int_to_ptr.vmem [resolvable:$true] %s198_s6 }
  0x28   :  { %v81_v7 = vsel %vm67_vm0, %v80_v4, 0.0  ;;  %v77_v11 = vsel %vm67_vm0, %v76_v8, 0.0  ;;  %60 = vst.msk [vmem:[#allocation4] sm:$0x1] %vm57_vm2, %v347_v25  ;;  %61 = vst.msk [vmem:[#allocation5] sm:$0x1] %vm57_vm2, %v347_v25  ;;  %p301_p2 = scmp.lt.s32.totalorder %s199_s6, %s199_s6 }
  0x29   :  { %v66_v6 = vmul.f32 %v65_v3, %v62_v0  ;;  %82 = vadd.xlane.f32.xlu1 %v81_v7  ;;  %v85_v10 = vsel %vm67_vm0, %v84_v5, 0.0  ;;  %s296_s7 = scalar_lea.vmem %s199_s6, 16  ;;  %s300_s8 = scalar_lea.vmem %s199_s6, 32 }
  0x2a   :  { %p297_p1 = scmp.ne.s32.totalorder %s199_s6, %s296_s7  ;;  %p302_p3 = scmp.lt.s32.totalorder %s300_s8, %s296_s7 }
  0x2b   :  { %v68_v9 = vsel %vm67_vm0, %v66_v6, 0.0 }
  0x2c   :  { %69 = vadd.xlane.f32.xlu0 %v68_v9  ;;  %p303_p4 = por %p302_p3, %p301_p2 }
  0x2d   :  { %86 = vadd.xlane.f32.xlu1 %v85_v10 }
  0x2e   :  { %v88_v54 = vld [vmem:[#allocation2] sm:$0x1]  ;;  %v104_v55 = vld [vmem:[#allocation3] sm:$0x1]  ;;  %p304_p5 = pnand %p303_p4, %p297_p1 }
  0x2f   :  { %v118_v60 = vld [vmem:[#allocation4] sm:$0x1]  ;;  %v132_v61 = vld [vmem:[#allocation5] sm:$0x1] }
  0x30   :  { %78 = vadd.xlane.f32.xlu0 %v77_v11 }
  0xb2   :  { %v83_v12 = vpop.xlane.xlu1 %82 }
  0xb3   :  { %v119_v24 = vsel %vm89_vm1, %v83_v12, 0.0 }
  0xb5   :  { %v70_v13 = vpop.xlane.xlu0 %69 }
  0xb6   :  { %v71_v14 = vmul.f32 1.442695, %v70_v13  ;;  %v87_v16 = vpop.xlane.xlu1 %86 }
  0xb7   :  { %v133_v18 = vsel %vm89_vm1, %v87_v16, 0.0 }
  0xb8   :  { %226 = vpow2.f32 %v71_v14 }
  0xb9   :  { %v79_v15 = vpop.xlane.xlu0 %78 }
  0xba   :  { %v105_v17 = vsel %vm89_vm1, %v79_v15, 0.0 }
  0xbb   :  { %106 = vadd.xlane.f32.xlu1 %v105_v17 }
  0xbf   :  { %134 = vadd.xlane.f32.xlu1 %v133_v18 }
  0xc5   :  { %v227_v19 = vpop.eup %226 }
  0xc6   :  { %v73_v20 = vadd.f32 1.0, %v227_v19 }
  0xc8   :  { %228 = vlog2.f32 %v73_v20 }
  0xd5   :  { %v229_v21 = vpop.eup %228 }
  0xd6   :  { %v75_v22 = vmul.f32 0.6931472, %v229_v21 }
  0xd8   :  { %v90_v23 = vsel %vm89_vm1, %v75_v22, 0.0 }
  0xd9   :  { %91 = vadd.xlane.f32.xlu0 %v90_v23 }
  0xdd   :  { %120 = vadd.xlane.f32.xlu0 %v119_v24 }
 0x144   :  { %v107_v26 = vpop.xlane.xlu1 %106 }
 0x145   :  { %v108_v27 = vrot.slane %v107_v26, 4 }
 0x147   :  { %v109_v29 = vadd.f32 %v108_v27, %v107_v26 }
 0x148   :  { %v135_v28 = vpop.xlane.xlu1 %134 }
 0x149   :  { %v136_v30 = vrot.slane %v135_v28, 4  ;;  %v110_v31 = vrot.slane %v109_v29, 2 }
 0x14b   :  { %v137_v32 = vadd.f32 %v136_v30, %v135_v28  ;;  %v111_v38 = vadd.f32 %v110_v31, %v109_v29 }
 0x14d   :  { %v138_v36 = vrot.slane %v137_v32, 2  ;;  %v112_v44 = vrot.slane %v111_v38, 1 }
 0x14f   :  { %v139_v43 = vadd.f32 %v138_v36, %v137_v32  ;;  %v113_v49 = vadd.f32 %v112_v44, %v111_v38 }
 0x151   :  { %v140_v50 = vrot.slane %v139_v43, 1 }
 0x153   :  { %v141_v53 = vadd.f32 %v140_v50, %v139_v43 }
 0x162   :  { %v92_v33 = vpop.xlane.xlu0 %91 }
 0x163   :  { %v93_v34 = vrot.slane %v92_v33, 4 }
 0x165   :  { %v94_v35 = vadd.f32 %v93_v34, %v92_v33 }
 0x166   :  { %v121_v37 = vpop.xlane.xlu0 %120 }
 0x167   :  { %v95_v39 = vrot.slane %v94_v35, 2  ;;  %v122_v40 = vrot.slane %v121_v37, 4 }
 0x169   :  { %v123_v41 = vadd.f32 %v122_v40, %v121_v37  ;;  %v96_v42 = vadd.f32 %v95_v39, %v94_v35 }
 0x16b   :  { %v124_v45 = vrot.slane %v123_v41, 2  ;;  %v97_v46 = vrot.slane %v96_v42, 1 }
 0x16d   :  { %v125_v47 = vadd.f32 %v124_v45, %v123_v41  ;;  %v98_v48 = vadd.f32 %v97_v46, %v96_v42 }
 0x16f   :  { %212 = vpush %v98_v48  ;;  %v126_v51 = vrot.slane %v125_v47, 1 }
 0x170   :  { %214 = vpush %v113_v49 }
 0x171   :  { %v127_v52 = vadd.f32 %v126_v51, %v125_v47 }
 0x173   :  { %216 = vpush %v127_v52 }
 0x174   :  { %218 = vpush %v141_v53 }
 0x1a0   :  { %s213_s0 = spop %212 }
 0x1a1   :  { %v100_v56 = vstv %s213_s0  ;;  %s215_s2 = spop %214 }
 0x1a2   :  { %v101_v57 = vadd.f32 %v100_v56, %v88_v54  ;;  %v115_v58 = vstv %s215_s2 }
 0x1a3   :  { %v116_v59 = vadd.f32 %v115_v58, %v104_v55 }
 0x1a4   :  { %103 = vst.msk [vmem:[#allocation2] sm:$0x1] %vm57_vm2, %v101_v57  ;;  %s217_s29 = spop %216 }
 0x1a5   :  { %117 = vst.msk [vmem:[#allocation3] sm:$0x1] %vm57_vm2, %v116_v59  ;;  %v129_v62 = vstv %s217_s29  ;;  %s219_s30 = spop %218 }
 0x1a6   :  { %v130_v63 = vadd.f32 %v129_v62, %v118_v60  ;;  %v143_v0 = vstv %s219_s30 }
 0x1a7   :  { %v144_v1 = vadd.f32 %v143_v0, %v132_v61 }
 0x1a8   :  { %131 = vst.msk [vmem:[#allocation4] sm:$0x1] %vm57_vm2, %v130_v63 }
 0x1a9   :  { %145 = vst.msk [vmem:[#allocation5] sm:$0x1] %vm57_vm2, %v144_v1 }
 0x1ab   :  { %v149_v2 = vld [vmem:[#allocation2] sm:$0x1] }
 0x1ac   :  { %v150_v3 = vld [vmem:[#allocation3] sm:$0x1]  ;;  %v180_v4 = vmul.f32 0.125, %v149_v2 }
 0x1ad   :  { %230 = vrsqrt.f32 %v150_v3 }
 0x1ae   :  { %181 = vst.msk [vmem:[#allocation13] sm:$0x1] %vm57_vm2, %v180_v4 }
 0x1af   :  { %v167_v5 = vld [vmem:[#allocation4] sm:$0x1] }
 0x1b0   :  { %307 = shalt.err (!%p304_p5)
}
 0x1b1   :  { %201 = dma.vmem_to_hbm [thread:$0]  %s199_s6, 16, %s404_s4, [#allocation14]   ;;  %v158_v6 = vld [vmem:[#allocation5] sm:$0x1]  ;;  %232 = vrsqrt.f32 %v167_v5  ;;  %vm153_vm3 = vcmp.eq.f32.partialorder %v150_v3, inf  ;;  %v156_v14 = vand.u32 2147483648, %v150_v3 }
 0x1b2   :  { %234 = vrsqrt.f32 %v158_v6  ;;  %vm161_vm4 = vcmp.eq.f32.partialorder %v158_v6, inf  ;;  %v164_v15 = vand.u32 2147483648, %v158_v6  ;;  %vm170_vm5 = vcmp.eq.f32.partialorder %v167_v5, inf  ;;  %s349_s4 = smov [#allocation12]  }
 0x1b3   :  { %vm155_vm6 = vcmp.eq.f32.partialorder %v150_v3, 0.0  ;;  %vm163_vm7 = vcmp.eq.f32.partialorder %v158_v6, 0.0  ;;  %v173_v20 = vand.u32 2147483648, %v167_v5  ;;  %vm172_vm8 = vcmp.eq.f32.partialorder %v167_v5, 0.0  ;;  %s188_s11 = sshll.u32 %s349_s4, 4  ;;  %s189_s11 = int_to_ptr.vmem [resolvable:$true] %s188_s11 }
 0x1b4   :  { %s316_s12 = scalar_lea.vmem %s189_s11, 16  ;;  %s320_s13 = scalar_lea.vmem %s189_s11, 32 }
 0x1b5   :  { %p317_p6 = scmp.ne.s32.totalorder %s189_s11, %s316_s12  ;;  %p321_p7 = scmp.lt.s32.totalorder %s189_s11, %s189_s11 }
 0x1b6   :  { %p322_p8 = scmp.lt.s32.totalorder %s320_s13, %s316_s12 }
 0x1b8   :  { %p323_p9 = por %p322_p8, %p321_p7 }
 0x1ba   :  { %v231_v7 = vpop.eup %230  ;;  %p324_p10 = pnand %p323_p9, %p317_p6 }
 0x1bb   :  { %v152_v8 = vmul.f32 %v231_v7, %v150_v3 }
 0x1bd   :  { %v154_v12 = vsel %vm153_vm3, %v150_v3, %v152_v8 }
 0x1be   :  { %v233_v9 = vpop.eup %232  ;;  %v157_v18 = vsel %vm155_vm6, %v156_v14, %v154_v12 }
 0x1bf   :  { %v235_v10 = vpop.eup %234  ;;  %v169_v11 = vmul.f32 %v233_v9, %v167_v5 }
 0x1c0   :  { %v160_v13 = vmul.f32 %v235_v10, %v158_v6 }
 0x1c1   :  { %v171_v17 = vsel %vm170_vm5, %v167_v5, %v169_v11 }
 0x1c2   :  { %v162_v16 = vsel %vm161_vm4, %v158_v6, %v160_v13  ;;  %v174_v22 = vsel %vm172_vm8, %v173_v20, %v171_v17 }
 0x1c3   :  { %v165_v19 = vsel %vm163_vm7, %v164_v15, %v162_v16 }
 0x1c4   :  { %v166_v21 = vadd.f32 %v165_v19, %v157_v18 }
 0x1c6   :  { %v175_v23 = vadd.f32 %v174_v22, %v166_v21 }
 0x1c8   :  { %v176_v24 = vmul.f32 0.1, %v175_v23 }
 0x1ca   :  { %v177_v25 = vadd.f32 %v176_v24, %v149_v2 }
 0x1cc   :  { %v178_v26 = vmul.f32 0.125, %v177_v25 }
 0x1ce   :  { %179 = vst.msk [vmem:[#allocation12] sm:$0x1] %vm57_vm2, %v178_v26 }
 0x1cf   :  { %327 = shalt.err (!%p324_p10)
}
 0x1d0   :  { %191 = dma.vmem_to_hbm [thread:$0]  %s189_s11, 16, %s403_s3, [#allocation8]  }
 0x1d1   :  { %340 = dma.done.wait [#allocation8], 16  }
 0x1d2   :  { %341 = vsyncadd [#allocation8], 4294967280 }
 0x1d3   :  { %342 = dma.done.wait [#allocation14], 16  }
 0x1d4   :  { %343 = vsyncadd [#allocation14], 4294967280 }
 0x1d5   :  { %208 = vsyncpa [#allocation7], 1 }
 0x1d6   :  { %209 = vsyncpa [#allocation10], 1 }
 0x1d7   :  { %210 = vsyncpa [#allocation8], 1 }
 0x1d8   :  { %211 = vsyncpa [#allocation14], 1 }

</bundles_post_ra>
